<compile_context>
chip_gen: v5e
topology: v5e:2x2
jax: 0.10.0
libtpu: 0.0.40
codegen_flags: <defaults>
</compile_context>

<pallas_src>
import math
import jax
import jax.numpy as jnp
from jax.experimental import pallas as pl
from jax.experimental.pallas import tpu as pltpu


def _gelu_tanh(x):
    # GELU with tanh approximation, matching nn.GELU(approximate='tanh').
    c = math.sqrt(2.0 / math.pi)
    return 0.5 * x * (1.0 + jnp.tanh(c * (x + 0.044715 * x * x * x)))


def mlp_kernel(x_ref, wfc_ref, bfc_ref, wproj_ref, bproj_ref, o_ref, acc_ref):
    # x_ref:     (tm, E)        in input dtype (bf16 fast path)
    # wfc_ref:   (E, tH)        bfc_ref:   (1, tH)   (f32)
    # wproj_ref: (tH, E)        bproj_ref: (1, E)    (f32)
    # o_ref:     (tm, E)        acc_ref:   (tm, E) f32 scratch
    k = pl.program_id(1)

    @pl.when(k == 0)
    def _():
        acc_ref[...] = jnp.zeros_like(acc_ref)

    # First matmul: (tm, E) @ (E, tH) -> (tm, tH), f32 accumulation on the MXU.
    h = jnp.dot(x_ref[...], wfc_ref[...], preferred_element_type=jnp.float32)
    h = h + bfc_ref[...].astype(jnp.float32)

    # GELU in f32 (tanh goes to the otherwise-idle EUP slot).
    g = _gelu_tanh(h)

    # Second matmul partial: (tm, tH) @ (tH, E) -> (tm, E); keep MXU operands
    # in the weight dtype (bf16 fast path), accumulate in f32.
    acc_ref[...] += jnp.dot(g.astype(wproj_ref.dtype), wproj_ref[...],
                            preferred_element_type=jnp.float32)

    @pl.when(k == pl.num_programs(1) - 1)
    def _():
        o_ref[...] = (acc_ref[...] +
                      bproj_ref[...].astype(jnp.float32)).astype(o_ref.dtype)


def _pick_tile(dim, candidates, prefer_multi):
    """Largest candidate dividing `dim` (optionally requiring >= 2 tiles)."""
    for c in candidates:
        if dim % c == 0 and (not prefer_multi or dim // c >= 2):
            return c
    return dim


def mlp_pallas(x, w_fc, b_fc, w_proj, b_proj, *, tm=None, th=None):
    """x: (B, T, E); w_fc: (E, 4E); w_proj: (4E, E). Returns (B, T, E)."""
    B, T, E = x.shape
    E_in, H = w_fc.shape
    assert E_in == E and w_proj.shape == (H, E)

    M = B * T
    x2d = x.reshape(M, E)

    # Pad ragged M up to a multiple of 8 (sublane granularity).
    M_pad = ((M + 7) // 8) * 8
    if M_pad != M:
        x2d = jnp.pad(x2d, ((0, M_pad - M), (0, 0)))

    # Row tile: prefer >=2 tiles (v7x megacore), multiple of 8, up to 512.
    if tm is None:
        tm = _pick_tile(M_pad, (512, 256, 128, 64, 32, 16, 8), prefer_multi=True)
    # Hidden (reduction) tile: multiple of 256 where possible (v6e/v7x MXU width).
    if th is None:
        th = _pick_tile(H, (512, 256, 128), prefer_multi=False)
    assert M_pad % tm == 0 and H % th == 0

    # Biases in f32; bias math stays in the f32 accumulator.
    b_fc_2d = b_fc.reshape(1, H).astype(jnp.float32)
    b_proj_2d = b_proj.reshape(1, E).astype(jnp.float32)

    grid = (M_pad // tm, H // th)

    dtype_bytes = jnp.dtype(x.dtype).itemsize
    cost = pl.CostEstimate(
        flops=4 * M_pad * E * H,                     # two matmuls
        transcendentals=M_pad * H,                   # tanh in GELU
        bytes_accessed=(x2d.size + w_fc.size + w_proj.size) * dtype_bytes
        + (b_fc_2d.size + b_proj_2d.size) * 4
        + M_pad * E * dtype_bytes,
    )

    out = pl.pallas_call(
        mlp_kernel,
        out_shape=jax.ShapeDtypeStruct((M_pad, E), x.dtype),
        grid_spec=pltpu.PrefetchScalarGridSpec(
            num_scalar_prefetch=0,
            grid=grid,
            in_specs=[
                pl.BlockSpec((tm, E), lambda i, k: (i, 0)),   # x row tile
                pl.BlockSpec((E, th), lambda i, k: (0, k)),   # W_fc slice
                pl.BlockSpec((1, th), lambda i, k: (0, k)),   # b_fc slice
                pl.BlockSpec((th, E), lambda i, k: (k, 0)),   # W_proj slice
                pl.BlockSpec((1, E), lambda i, k: (0, 0)),    # b_proj
            ],
            out_specs=pl.BlockSpec((tm, E), lambda i, k: (i, 0)),
            scratch_shapes=[pltpu.VMEM((tm, E), jnp.float32)],
        ),
        compiler_params=pltpu.CompilerParams(
            dimension_semantics=("parallel", "arbitrary"),
            vmem_limit_bytes=32 * 1024 * 1024,
        ),
        cost_estimate=cost,
    )(x2d, w_fc, b_fc_2d, w_proj, b_proj_2d)

    if M_pad != M:
        out = out[:M]
    return out.reshape(B, T, E)
    # NOTE: for the toy E=32 the output last dim is < 128 (masked vst); real
    # GPT-2 (E=768) is lane-dense, which is where this kernel is tuned.


def mlp_reference(x, w_fc, b_fc, w_proj, b_proj, out_dtype):
    """Mirrors the kernel's mixed precision: matmuls in the operand dtype with
    f32 accumulation, bias/GELU in f32."""
    B, T, E = x.shape
    x2d = x.reshape(-1, E)
    h = jnp.dot(x2d, w_fc, preferred_element_type=jnp.float32)
    h = h + b_fc.astype(jnp.float32)
    g = _gelu_tanh(h)
    o = jnp.dot(g.astype(w_proj.dtype), w_proj,
                preferred_element_type=jnp.float32)
    o = o + b_proj.astype(jnp.float32)
    return o.astype(out_dtype).reshape(B, T, E)


if __name__ == "__main__":
    # Small GPT-2-like config: n_embd=32, batch=2, seq=8.
    B, T, E = 2, 8, 32
    H = 4 * E

    key = jax.random.PRNGKey(0)
    kx, k1, k2, k3, k4 = jax.random.split(key, 5)

    # Parameters in f32; activations/weights fed to the kernel in bf16
    # (MXU-native), biases stay f32.
    x_f32 = jax.random.normal(kx, (B, T, E), dtype=jnp.float32)
    w_fc_f32 = jax.random.normal(k1, (E, H), dtype=jnp.float32) * 0.02
    b_fc = jax.random.normal(k2, (H,), dtype=jnp.float32) * 0.02
    w_proj_f32 = jax.random.normal(k3, (H, E), dtype=jnp.float32) * 0.02
    b_proj = jax.random.normal(k4, (E,), dtype=jnp.float32) * 0.02

    x = x_f32.astype(jnp.bfloat16)
    w_fc = w_fc_f32.astype(jnp.bfloat16)
    w_proj = w_proj_f32.astype(jnp.bfloat16)

    out = mlp_pallas(x, w_fc, b_fc, w_proj, b_proj)
    out = jax.block_until_ready(out)

    ref = mlp_reference(x, w_fc, b_fc, w_proj, b_proj, out.dtype)
    assert out.shape == (B, T, E)
    assert jnp.allclose(out.astype(jnp.float32), ref.astype(jnp.float32),
                        atol=1e-2, rtol=1e-2), "mismatch vs reference"

    print("KERNEL_OK")
</pallas_src>

<mosaic_0001>
module attributes {stable_mosaic.version = 11 : i64} {
  func.func @mlp_kernel(%arg0: i32, %arg1: i32, %arg2: memref<8x32xbf16, #tpu.memory_space<vmem>>, %arg3: memref<32x128xbf16, #tpu.memory_space<vmem>>, %arg4: memref<1x128xf32, #tpu.memory_space<vmem>>, %arg5: memref<128x32xbf16, #tpu.memory_space<vmem>>, %arg6: memref<1x32xf32, #tpu.memory_space<vmem>>, %arg7: memref<8x32xbf16, #tpu.memory_space<vmem>>, %arg8: memref<8x32xf32, #tpu.memory_space<vmem>>) attributes {dimension_semantics = [#tpu.dimension_semantics<parallel>, #tpu.dimension_semantics<arbitrary>], iteration_bounds = array<i64: 2, 1>, scalar_prefetch = 0 : i64, scratch_operands = 1 : i64, tpu.core_type = #tpu.core_type<tc>, window_params = [{transform_indices = @transform_0, window_bounds = array<i64: 8, 32>}, {transform_indices = @transform_1, window_bounds = array<i64: 32, 128>}, {transform_indices = @transform_2, window_bounds = array<i64: 1, 128>}, {transform_indices = @transform_3, window_bounds = array<i64: 128, 32>}, {pipeline_mode = #tpu.pipeline_mode<synchronous>, transform_indices = @transform_4, window_bounds = array<i64: 1, 32>}, {transform_indices = @transform_5, window_bounds = array<i64: 8, 32>}]} {
    %c0_i32 = arith.constant 0 : i32
    %0 = arith.cmpi eq, %arg1, %c0_i32 : i32
    %1 = arith.extui %0 : i1 to i32
    %c0_i32_0 = arith.constant 0 : i32
    %2 = arith.cmpi ne, %1, %c0_i32_0 : i32
    scf.if %2 {
      %cst_19 = arith.constant 0.000000e+00 : f32
      %31 = vector.broadcast %cst_19 : f32 to vector<8x32xf32>
      %c0_20 = arith.constant 0 : index
      %c0_21 = arith.constant 0 : index
      %32 = vector.load %arg8[%c0_20, %c0_21] : memref<8x32xf32, #tpu.memory_space<vmem>>, vector<8x32xf32>
      tpu.vector_store %arg8[%c0_20, %c0_21], %31 {strides = array<i32>} : memref<8x32xf32, #tpu.memory_space<vmem>>, vector<8x32xf32>,
    } else {
    }
    %c0 = arith.constant 0 : index
    %c0_1 = arith.constant 0 : index
    %3 = vector.load %arg2[%c0, %c0_1] : memref<8x32xbf16, #tpu.memory_space<vmem>>, vector<8x32xbf16>
    %c0_2 = arith.constant 0 : index
    %c0_3 = arith.constant 0 : index
    %4 = vector.load %arg3[%c0_2, %c0_3] : memref<32x128xbf16, #tpu.memory_space<vmem>>, vector<32x128xbf16>
    %cst = arith.constant dense<0.000000e+00> : vector<8x128xf32>
    %5 = tpu.matmul %3, %4, %cst {dimension_numbers = #tpu.dot_dimension_numbers<[1], [0], [0], [1], [0, 0, 1, 1], [], []>} : vector<8x32xbf16>, vector<32x128xbf16>, vector<8x128xf32> -> vector<8x128xf32>
    %c0_4 = arith.constant 0 : index
    %c0_5 = arith.constant 0 : index
    %6 = vector.load %arg4[%c0_4, %c0_5] : memref<1x128xf32, #tpu.memory_space<vmem>>, vector<1x128xf32>
    %7 = vector.broadcast %6 : vector<1x128xf32> to vector<8x128xf32>
    %8 = arith.addf %5, %7 : vector<8x128xf32>
    %cst_6 = arith.constant 5.000000e-01 : f32
    %9 = vector.broadcast %cst_6 : f32 to vector<8x128xf32>
    %10 = arith.mulf %9, %8 : vector<8x128xf32>
    %cst_7 = arith.constant 4.471500e-02 : f32
    %11 = vector.broadcast %cst_7 : f32 to vector<8x128xf32>
    %12 = arith.mulf %11, %8 : vector<8x128xf32>
    %13 = arith.mulf %12, %8 : vector<8x128xf32>
    %14 = arith.mulf %13, %8 : vector<8x128xf32>
    %15 = arith.addf %8, %14 : vector<8x128xf32>
    %cst_8 = arith.constant 0.797884583 : f32
    %16 = vector.broadcast %cst_8 : f32 to vector<8x128xf32>
    %17 = arith.mulf %16, %15 : vector<8x128xf32>
    %18 = math.tanh %17 : vector<8x128xf32>
    %cst_9 = arith.constant 1.000000e+00 : f32
    %19 = vector.broadcast %cst_9 : f32 to vector<8x128xf32>
    %20 = arith.addf %19, %18 : vector<8x128xf32>
    %21 = arith.mulf %10, %20 : vector<8x128xf32>
    %c0_10 = arith.constant 0 : index
    %c0_11 = arith.constant 0 : index
    %22 = vector.load %arg8[%c0_10, %c0_11] : memref<8x32xf32, #tpu.memory_space<vmem>>, vector<8x32xf32>
    %23 = arith.truncf %21 : vector<8x128xf32> to vector<8x128xbf16>
    %c0_12 = arith.constant 0 : index
    %c0_13 = arith.constant 0 : index
    %24 = vector.load %arg5[%c0_12, %c0_13] : memref<128x32xbf16, #tpu.memory_space<vmem>>, vector<128x32xbf16>
    %cst_14 = arith.constant dense<0.000000e+00> : vector<8x32xf32>
    %25 = tpu.matmul %23, %24, %cst_14 {dimension_numbers = #tpu.dot_dimension_numbers<[1], [0], [0], [1], [0, 0, 1, 1], [], []>} : vector<8x128xbf16>, vector<128x32xbf16>, vector<8x32xf32> -> vector<8x32xf32>
    %26 = arith.addf %22, %25 : vector<8x32xf32>
    %c0_15 = arith.constant 0 : index
    %c0_16 = arith.constant 0 : index
    %27 = vector.load %arg8[%c0_15, %c0_16] : memref<8x32xf32, #tpu.memory_space<vmem>>, vector<8x32xf32>
    tpu.vector_store %arg8[%c0_15, %c0_16], %26 {strides = array<i32>} : memref<8x32xf32, #tpu.memory_space<vmem>>, vector<8x32xf32>,
    %c0_i32_17 = arith.constant 0 : i32
    %28 = arith.cmpi eq, %arg1, %c0_i32_17 : i32
    %29 = arith.extui %28 : i1 to i32
    %c0_i32_18 = arith.constant 0 : i32
    %30 = arith.cmpi ne, %29, %c0_i32_18 : i32
    scf.if %30 {
      %c0_19 = arith.constant 0 : index
      %c0_20 = arith.constant 0 : index
      %31 = vector.load %arg8[%c0_19, %c0_20] : memref<8x32xf32, #tpu.memory_space<vmem>>, vector<8x32xf32>
      %c0_21 = arith.constant 0 : index
      %c0_22 = arith.constant 0 : index
      %32 = vector.load %arg6[%c0_21, %c0_22] : memref<1x32xf32, #tpu.memory_space<vmem>>, vector<1x32xf32>
      %33 = vector.broadcast %32 : vector<1x32xf32> to vector<8x32xf32>
      %34 = arith.addf %31, %33 : vector<8x32xf32>
      %35 = arith.truncf %34 : vector<8x32xf32> to vector<8x32xbf16>
      %c0_23 = arith.constant 0 : index
      %c0_24 = arith.constant 0 : index
      %36 = vector.load %arg7[%c0_23, %c0_24] : memref<8x32xbf16, #tpu.memory_space<vmem>>, vector<8x32xbf16>
      tpu.vector_store %arg7[%c0_23, %c0_24], %35 {strides = array<i32>} : memref<8x32xbf16, #tpu.memory_space<vmem>>, vector<8x32xbf16>,
    } else {
    }
    return
  }
  func.func @transform_0(%arg0: i32, %arg1: i32) -> (i32, i32) {
    %c0_i32 = arith.constant 0 : i32
    %c0_i32_0 = arith.constant 0 : i32
    return %arg0, %c0_i32 : i32, i32
  }
  func.func @transform_1(%arg0: i32, %arg1: i32) -> (i32, i32) {
    %c0_i32 = arith.constant 0 : i32
    %c0_i32_0 = arith.constant 0 : i32
    return %c0_i32, %arg1 : i32, i32
  }
  func.func @transform_2(%arg0: i32, %arg1: i32) -> (i32, i32) {
    %c0_i32 = arith.constant 0 : i32
    %c0_i32_0 = arith.constant 0 : i32
    return %c0_i32, %arg1 : i32, i32
  }
  func.func @transform_3(%arg0: i32, %arg1: i32) -> (i32, i32) {
    %c0_i32 = arith.constant 0 : i32
    %c0_i32_0 = arith.constant 0 : i32
    return %arg1, %c0_i32 : i32, i32
  }
  func.func @transform_4(%arg0: i32, %arg1: i32) -> (i32, i32) {
    %c0_i32 = arith.constant 0 : i32
    %c0_i32_0 = arith.constant 0 : i32
    %c0_i32_1 = arith.constant 0 : i32
    return %c0_i32, %c0_i32_0 : i32, i32
  }
  func.func @transform_5(%arg0: i32, %arg1: i32) -> (i32, i32) {
    %c0_i32 = arith.constant 0 : i32
    %c0_i32_0 = arith.constant 0 : i32
    return %arg0, %c0_i32 : i32, i32
  }
}

</mosaic_0001>

<bundles_post_ra>
// kernel: tpu_custom_call.1
= control target key start
LH: loop header
LB: loop body
LE: loop exit
PB: predicated region body
PF: predicated region fallthrough
CT: control target
= control target key end

     0   :  { %10 = vsyncpa [#allocation4], 0  ;;  %s929_s0 = inlined_call_operand.vmem [shape: bf16[16,32], index: 0, kind: input, shape index: {}]   ;;  %s930_s1 = inlined_call_operand.vmem [shape: bf16[32,128], index: 1, kind: input, shape index: {}]   ;;  %s931_s2 = inlined_call_operand.vmem [shape: f32[1,128], index: 2, kind: input, shape index: {}]   ;;  %s932_s3 = inlined_call_operand.vmem [shape: bf16[128,32], index: 3, kind: input, shape index: {}]   ;;  %s933_s4 = inlined_call_operand.vmem [shape: f32[1,32], index: 4, kind: input, shape index: {}]   ;;  %s934_s5 = inlined_call_operand.hbm [shape: bf16[16,32], index: 5, kind: output, shape index: {}]  }
   0x1   :  { %12 = vsyncpa [#allocation4 + $0x1], 0  ;;  %s793_s18 = smov 0   ;;  %s795_s19 = smov 0  }
   0x2   :  { %s797_s20 = smov 0   ;;  %s799_s21 = smov 0  }
   0x3   :  { %s801_s22 = smov 0   ;;  %s803_s23 = smov 0  }
   0x4 LB: > { %s557_s24 = sadd.s32 4294967295, %s760_s23   ;;  %s558_s25 = sadd.s32 4294967294, %s760_s23   ;;  %s760_s23 = sphi %s803_s23, %s18_s23   ;;  %s756_s22 = sphi %s801_s22, %s941_s22   ;;  %s752_s21 = sphi %s799_s21, %s940_s21   ;;  %s748_s20 = sphi %s797_s20, %s939_s20   ;;  %s744_s19 = sphi %s795_s19, %s938_s19   ;;  %s740_s18 = sphi %s793_s18, %s937_s18  }
   0x5   : > { %s30_s26 = sadd.s32 1, %s756_s22  ;;  %s162_s27 = sadd.s32 1, %s748_s20 }
   0x6   : > { %p32_p0 = scmp.ge.s32.totalorder %s30_s26, 2  ;;  %p172_p1 = scmp.ne.s32.totalorder %s748_s20, %s744_s19 }
   0x7   : > { %p173_p2 = scmp.eq.s32.totalorder %s557_s24, 1  ;;  %p178_p3 = scmp.ne.s32.totalorder %s744_s19, %s740_s18 }
   0x8   : > { %s943_s26 = smov (%p32_p0, %s30_s26), 0  ;;  %p179_p5 = scmp.eq.s32.totalorder %s558_s25, 1 }
   0x9   : > { %p833_p4 = por %p173_p2, %p172_p1  ;;  %s159_s29 = ssub.s32 %s756_s22, %s943_s26 }
   0xa   : > { %p564_p6 = scmp.ge.s32.totalorder %s760_s23, 1  ;;  %p160_p7 = scmp.eq.s32.totalorder %s159_s29, 0 }
   0xb   : > { %p840_p8 = por %p179_p5, %p178_p3  ;;  %p229_p9 = scmp.lt.s32.totalorder %s760_s23, 3 }
   0xc   : > { %s846_s6 = scalar_select %p160_p7, %s748_s20, %s162_s27  }
   0xd   : > { %p230_p10 = pnand %p564_p6, %p229_p9 }
   0xe   : > { %p268_p11 = scmp.lt.s32.totalorder (!%p230_p10), %s752_s21, 1  ;;  %s609_s29 = sshll.u32 (!%p230_p10), %s752_s21, 2 }
   0xf   : > { %233 = sbr.rel (%p230_p10) target bundleno = 322 (0x142), region = 40  ;;  %s443_s11 = scalar_lea.hbm (!%p230_p10), %s934_s5, %s609_s29 }
  0x10   : > { %s447_s14 = sshll.u32 (!%p230_p10), %s443_s11, 4  ;;  %s448_s14 = int_to_ptr.hbm [resolvable:$true] %s447_s14 }
  0x11   : > { %s696_s15 = sshra.s32 (!%p230_p10), %s448_s14, 4  ;;  %s697_s15 = int_to_ptr.hbm [resolvable:$true] %s696_s15 }
  0x12   : > { %p703_p1 = scmp.lt.s32.totalorder (!%p230_p10), %s697_s15, %s934_s5 }
  0x14   : > { %v613_v0 = vld [vmem:[%s930_s1 + $0x8] sm:$0xff]  ;;  %vm290_vm0 = vcmask 261120   ;;  %v621_v1 = vld [vmem:[%s932_s3 + $0x38] sm:$0xff]  ;;  %v762_v2 = vmov 0.0   ;;  %v612_v3 = vld [vmem:[%s930_s1] sm:$0xff]  ;;  %s269_s13 = scalar_select %p268_p11, %s752_s21, 1 }
  0x15   : > { %291 = vst.msk [vmem:[#allocation2] sm:$0xff] %vm290_vm0, %v762_v2  ;;  %323 = vmatpush.bf16.msra.mxu0 %v613_v0  ;;  %405 = vmatpush.bf16.msra.mxu1 %v621_v1  ;;  %v620_v4 = vld [vmem:[%s932_s3 + $0x30] sm:$0xff]  ;;  %v619_v6 = vld [vmem:[%s932_s3 + $0x28] sm:$0xff]  ;;  %v618_v7 = vld [vmem:[%s932_s3 + $0x20] sm:$0xff]  ;;  %vm430_vm1 = vcmask 257024  }
  0x16   : > { %s566_s16 = sshll.u32 %s269_s13, 2  ;;  %v617_v8 = vld [vmem:[%s932_s3 + $0x18] sm:$0xff]  ;;  %v616_v9 = vld [vmem:[%s932_s3 + $0x10] sm:$0xff]  ;;  %v615_v10 = vld [vmem:[%s932_s3 + $0x8] sm:$0xff] }
  0x17   : > { %s271_s25 = scalar_lea.vmem %s929_s0, %s566_s16  ;;  %v614_v11 = vld [vmem:[%s932_s3] sm:$0xff]  ;;  %s698_s16 = scalar_lea.hbm %s697_s15, 4 }
  0x18   : > { %v292_v5 = vld [vmem:[%s271_s25] sm:$0xf]  ;;  %s265_s25 = sand.u32 1, %s744_s19   ;;  %p699_p12 = scmp.ne.s32.totalorder %s697_s15, %s698_s16 }
  0x19   : > { %324 = vmatpush.bf16.msra.mxu0 %v612_v3  ;;  %406 = vmatpush.bf16.msra.mxu1 %v620_v4  ;;  %v678_v12 = vld [vmem:[%s931_s2] ss:$0 sm:$0xff]  ;;  %s565_s27 = sshll.u32 %s265_s25, 2  ;;  %s433_s21 = scalar_lea.sflag [#allocation4], %s265_s25 }
  0x1a   : > { %v679_v29 = vld [vmem:[%s933_s4] ss:$0 sm:$0xff]  ;;  %s267_s12 = scalar_lea.vmem [#allocation3], %s565_s27  ;;  %p700_p13 = pnand %p699_p12, %p833_p4 }
  0x1b   : > { %s445_s13 = sshll.u32 %s267_s12, 4  ;;  %s702_s27 = scalar_lea.hbm %s934_s5, 8  ;;  %s446_s13 = int_to_ptr.vmem [resolvable:$true] %s445_s13 }
  0x1c   : > { %575 = vmatmul.msk.bf16.vlgmr.msra.gmra.mxu0 %vm290_vm0, %v292_v5  ;;  %v339_v26 = vld [vmem:[#allocation2] sm:$0xff]  ;;  %p701_p0 = pneg %p700_p13  ;;  %p704_p2 = scmp.lt.s32.totalorder %s702_s27, %s698_s16 }
  0x1d   : > { %407 = vmatpush.bf16.msra.mxu1 %v619_v6 }
  0x1e   : > { %p705_p3 = por %p704_p2, %p703_p1 }
  0x20   : > { %p706_p5 = pnand %p705_p3, %p701_p0 }
  0x21   : > { %408 = vmatpush.bf16.msra.mxu1 %v618_v7 }
  0x25   : > { %409 = vmatpush.bf16.msra.mxu1 %v617_v8 }
  0x29   : > { %410 = vmatpush.bf16.msra.mxu1 %v616_v9 }
  0x2d   : > { %411 = vmatpush.bf16.msra.mxu1 %v615_v10 }
  0x31   : > { %412 = vmatpush.bf16.msra.mxu1 %v614_v11 }
  0x99   : > { %v326_v13 = vpop.f32.mrf.mxu0 }
  0x9a   : > { %v327_v14 = vadd.f32 %v678_v12, %v326_v13 }
  0x9c   : > { %v331_v15 = vmul.f32 0.044715, %v327_v14  ;;  %v330_v22 = vmul.f32 0.5, %v327_v14 }
  0x9e   : > { %v332_v16 = vmul.f32 %v331_v15, %v327_v14 }
  0xa0   : > { %v333_v17 = vmul.f32 %v332_v16, %v327_v14 }
  0xa1   : > { %v328_v18 = vpop.f32.mrf.mxu0 }
  0xa2   : > { %v334_v19 = vadd.f32 %v333_v17, %v327_v14 }
  0xa4   : > { %v335_v20 = vmul.f32 0.7978846, %v334_v19 }
  0xa6   : > { %680 = vtanh.f32 %v335_v20 }
  0xac   : > { %v681_v21 = vpop.eup %680 }
  0xad   : > { %v337_v23 = vadd.f32 1.0, %v681_v21 }
  0xaf   : > { %v338_v24 = vmul.f32 %v337_v23, %v330_v22 }
  0xb1   : > { %v340_v25 = vpack.c.bf16 %v338_v24, %v338_v24 }
  0xb3   : > { %413 = vmatmul.bf16.vlgmr.msra.gmra.mxu1 %v340_v25 }
 0x130   : > { %v414_v27 = vpop.f32.mrf.mxu1 }
 0x131   : > { %v418_v28 = vadd.f32 %v414_v27, %v339_v26 }
 0x133   : > { %419 = vst.msk [vmem:[#allocation2] sm:$0xff] %vm290_vm0, %v418_v28 }
 0x138   : > { %v416_v30 = vpop.f32.mrf.mxu1 }
 0x13a   : > { %v423_v31 = vld [vmem:[#allocation2] sm:$0xff] }
 0x13b   : > { %v428_v32 = vadd.f32 %v679_v29, %v423_v31 }
 0x13d   : > { %v429_v33 = vpack.c.bf16 %v428_v32, %v428_v32 }
 0x13f   : > { %431 = vst.msk [vmem:[%s267_s12] sm:$0xf] %vm430_vm1, %v429_v33 }
 0x140   : > { %709 = shalt.err (!%p706_p5)
}
 0x141   : > { %622 = dma.vmem_to_hbm [thread:$0]  (%p833_p4), %s446_s13, 64, %s448_s14, %s433_s21  }
 0x142 PF: > { %p628_p6 = scmp.ge.s32.totalorder %s760_s23, 2  ;;  %s459_s25 = sand.u32 1, %s740_s18  }
 0x143   : > { %s460_s8 = scalar_lea.sflag [#allocation4], %s459_s25 }
 0x144   : > { %p625_p7 = pnand %p628_p6, %p840_p8 }
 0x146   : > { %p626_p9 = pneg %p625_p7 }
 0x148   : > { %735 = dma.done.wait (%p626_p9), %s460_s8, 64  }
 0x149   : > { %737 = vsyncadd (%p626_p9), %s460_s8, 4294967232  ;;  %s18_s23 = sadd.s32 1, %s760_s23   ;;  %s937_s18 = smov %s744_s19 }
 0x14a   : > { %p15_p10 = scmp.ge.s32.totalorder %s18_s23, 4   ;;  %s938_s19 = smov %s748_s20 }
 0x14b   : > { %s939_s20 = smov %s846_s6  ;;  %s940_s21 = smov %s756_s22 }
 0x14c   : > { %s941_s22 = smov %s943_s26  ;;  %17 = sbr.rel (!%p15_p10) target bundleno = 4 (0x4), region = 92 }
 0x151   :  { %466 = vsyncpa [#allocation4], 1 }
 0x152   :  { %468 = vsyncpa [#allocation4 + $0x1], 1 }

</bundles_post_ra>
